<compile_context>
chip_gen: v7x
topology: tpu7x:2x2x1
jax: 0.10.0
libtpu: 0.0.40
codegen_flags: <defaults>
</compile_context>

<pallas_src>
import functools
import math

import jax
import jax.numpy as jnp
import numpy as np
from jax.experimental import pallas as pl
from jax.experimental.pallas import tpu as pltpu


def _mha_kernel(q_ref, k_ref, v_ref, wq_ref, wk_ref, wv_ref, wo_ref, o_ref,
                *, n_heads, dk, dv):
    """Fused multi-head attention for one batch element.

    Projections, scores, head-axis softmax, attention*V, the torch raw-order
    remix and the Wo projection all stay in VMEM; only the final (T, dmodel)
    tile is stored, so the lane-sparse (last-dim dv) per-head intermediates
    never touch HBM.
    """
    H = n_heads
    T = q_ref.shape[1]
    scale = 1.0 / math.sqrt(dk)

    q = q_ref[0]          # (T, dmodel)
    k = k_ref[0]          # (T, dmodel)
    v = v_ref[0]          # (T, dmodel)

    # --- Fused all-head projections: one wide MXU matmul per tensor. -------
    qp = jnp.dot(q, wq_ref[...], preferred_element_type=jnp.float32)   # (T, H*dk)
    kp = jnp.dot(k, wk_ref[...], preferred_element_type=jnp.float32)   # (T, H*dk)
    vp = jnp.dot(v, wv_ref[...], preferred_element_type=jnp.float32)   # (T, H*dv)

    # Per-head views stacked on a leading batch axis (static lane slices).
    qh = jnp.stack([qp[:, h * dk:(h + 1) * dk] for h in range(H)], axis=0)  # (H,T,dk)
    kh = jnp.stack([kp[:, h * dk:(h + 1) * dk] for h in range(H)], axis=0)  # (H,T,dk)
    vh = jnp.stack([vp[:, h * dv:(h + 1) * dv] for h in range(H)], axis=0)  # (H,T,dv)

    # --- Scores: batched dot contracting the last axes (no transpose). -----
    s = scale * jnp.einsum('htk,hsk->hts', qh, kh,
                           preferred_element_type=jnp.float32)          # (H,T,T)

    # --- Softmax ACROSS HEADS (axis 0): PyTorch legacy no-dim default. ------
    m = jnp.max(s, axis=0, keepdims=True)                               # (1,T,T)
    e = jnp.exp(s - m)
    den = jnp.sum(e, axis=0, keepdims=True)
    # pl.reciprocal(approx=True) would move this to the otherwise-idle EUP
    # slot; kept exact so the f32 parity check below holds at 1e-4.
    p = e * pl.reciprocal(den, approx=False)                            # (H,T,T)

    # --- Attention-weighted values: batched dot. ----------------------------
    att = jnp.einsum('hts,hsv->htv', p, vh,
                     preferred_element_type=jnp.float32)                # (H,T,dv)

    # --- Torch raw C-order reshape (H,T,dv) -> (T, H*dv), built lane-dense. --
    # Output row t' = h*(T//H) + r holds head h's rows r*H .. r*H+H-1 laid
    # side by side along lanes (requires H | T).
    rpg = T // H
    col_blocks = []
    for g in range(H):
        rows = [att[h, r * H + g:r * H + g + 1, :]
                for h in range(H) for r in range(rpg)]
        col_blocks.append(jnp.concatenate(rows, axis=0))                # (T, dv)
    att_mixed = jnp.concatenate(col_blocks, axis=1)                     # (T, H*dv)
    # TODO(synk): at realistic T, replace the unrolled static-slice gather above
    # with a strided read out of a VMEM scratch (ref[h, pl.ds(g, T//H, stride=H), :]).

    # --- Fused output projection; single lane-dense (T, dmodel) store. ------
    out = jnp.dot(att_mixed, wo_ref[...], preferred_element_type=jnp.float32)
    o_ref[0] = out.astype(o_ref.dtype)


def multi_head_attention(Q, K, V, Wq, Wk, Wv, Wo):
    B, T, dmodel = Q.shape
    H, _, dk = Wq.shape
    dv = Wv.shape[-1]
    # TODO(synk): general T % H != 0 needs a slower per-row gather for the
    # torch raw-order remix; all usages in the lab keep H | T.
    assert T % H == 0, "fused remix path assumes N_heads divides T"

    # One-time host-side repack so the kernel can do wide, MXU-friendly
    # projections: (H, dmodel, d) -> (dmodel, H*d), column block h == head h.
    WqW = jnp.transpose(Wq, (1, 0, 2)).reshape(dmodel, H * dk)
    WkW = jnp.transpose(Wk, (1, 0, 2)).reshape(dmodel, H * dk)
    WvW = jnp.transpose(Wv, (1, 0, 2)).reshape(dmodel, H * dv)

    kernel = functools.partial(_mha_kernel, n_heads=H, dk=dk, dv=dv)
    out = pl.pallas_call(
        kernel,
        out_shape=jax.ShapeDtypeStruct((B, T, dmodel), jnp.float32),
        grid=(B,),
        in_specs=[
            pl.BlockSpec((1, T, dmodel), lambda b: (b, 0, 0)),   # Q
            pl.BlockSpec((1, T, dmodel), lambda b: (b, 0, 0)),   # K
            pl.BlockSpec((1, T, dmodel), lambda b: (b, 0, 0)),   # V
            pl.BlockSpec((dmodel, H * dk), lambda b: (0, 0)),    # Wq (wide)
            pl.BlockSpec((dmodel, H * dk), lambda b: (0, 0)),    # Wk (wide)
            pl.BlockSpec((dmodel, H * dv), lambda b: (0, 0)),    # Wv (wide)
            pl.BlockSpec((H * dv, dmodel), lambda b: (0, 0)),    # Wo
        ],
        out_specs=pl.BlockSpec((1, T, dmodel), lambda b: (b, 0, 0)),
        compiler_params=pltpu.CompilerParams(
            dimension_semantics=("parallel",)),
    )(Q, K, V, WqW, WkW, WvW, Wo)
    return out


def _reference(Q, K, V, Wq, Wk, Wv, Wo, dk):
    B, T, _ = Q.shape
    H, _, dv = Wv.shape
    Qp = jnp.einsum("btd,hdk->bhtk", Q, Wq)
    Kp = jnp.einsum("btd,hdk->bhtk", K, Wk)
    Vp = jnp.einsum("btd,hdv->bhtv", V, Wv)
    s = jnp.einsum("bhtk,bhsk->bhts", Qp, Kp) / math.sqrt(dk)
    p = jax.nn.softmax(s, axis=1)  # PyTorch legacy default: over heads
    att = jnp.einsum("bhts,bhsv->bhtv", p, Vp)
    att = att.reshape(B, T, H * dv)
    return att @ Wo


if __name__ == "__main__":
    # Small shapes consistent with the module.
    B, T, dmodel = 2, 8, 32
    N_heads, dk, dv = 4, 8, 8

    key = jax.random.PRNGKey(0)
    kq, kk, kv, kwq, kwk, kwv, kwo = jax.random.split(key, 7)

    Q = jax.random.normal(kq, (B, T, dmodel), dtype=jnp.float32)
    K = jax.random.normal(kk, (B, T, dmodel), dtype=jnp.float32)
    V = jax.random.normal(kv, (B, T, dmodel), dtype=jnp.float32)

    # Deterministic uniform(-1, 1) init, matching torch.Tensor(...).uniform_(-1, 1).
    Wq = jax.random.uniform(kwq, (N_heads, dmodel, dk), jnp.float32, -1.0, 1.0)
    Wk = jax.random.uniform(kwk, (N_heads, dmodel, dk), jnp.float32, -1.0, 1.0)
    Wv = jax.random.uniform(kwv, (N_heads, dmodel, dv), jnp.float32, -1.0, 1.0)
    Wo = jax.random.uniform(kwo, (N_heads * dv, dmodel), jnp.float32, -1.0, 1.0)

    out = multi_head_attention(Q, K, V, Wq, Wk, Wv, Wo)
    out = jax.block_until_ready(out)

    ref = _reference(Q, K, V, Wq, Wk, Wv, Wo, dk)
    np.testing.assert_allclose(np.asarray(out), np.asarray(ref),
                               rtol=1e-4, atol=1e-4)

    print("KERNEL_OK")
</pallas_src>

<mosaic_0001>
module attributes {stable_mosaic.version = 11 : i64} {
  func.func @_mha_kernel(%arg0: i32, %arg1: memref<1x8x32xf32, #tpu.memory_space<vmem>>, %arg2: memref<1x8x32xf32, #tpu.memory_space<vmem>>, %arg3: memref<1x8x32xf32, #tpu.memory_space<vmem>>, %arg4: memref<32x32xf32, #tpu.memory_space<vmem>>, %arg5: memref<32x32xf32, #tpu.memory_space<vmem>>, %arg6: memref<32x32xf32, #tpu.memory_space<vmem>>, %arg7: memref<32x32xf32, #tpu.memory_space<vmem>>, %arg8: memref<1x8x32xf32, #tpu.memory_space<vmem>>) attributes {dimension_semantics = [#tpu.dimension_semantics<parallel>], iteration_bounds = array<i64: 2>, scalar_prefetch = 0 : i64, scratch_operands = 0 : i64, tpu.core_type = #tpu.core_type<tc>, window_params = [{transform_indices = @transform_0, window_bounds = array<i64: 1, 8, 32>}, {transform_indices = @transform_1, window_bounds = array<i64: 1, 8, 32>}, {transform_indices = @transform_2, window_bounds = array<i64: 1, 8, 32>}, {pipeline_mode = #tpu.pipeline_mode<synchronous>, transform_indices = @transform_3, window_bounds = array<i64: 32, 32>}, {pipeline_mode = #tpu.pipeline_mode<synchronous>, transform_indices = @transform_4, window_bounds = array<i64: 32, 32>}, {pipeline_mode = #tpu.pipeline_mode<synchronous>, transform_indices = @transform_5, window_bounds = array<i64: 32, 32>}, {pipeline_mode = #tpu.pipeline_mode<synchronous>, transform_indices = @transform_6, window_bounds = array<i64: 32, 32>}, {transform_indices = @transform_7, window_bounds = array<i64: 1, 8, 32>}]} {
    %c0 = arith.constant 0 : index
    %c0_0 = arith.constant 0 : index
    %c0_1 = arith.constant 0 : index
    %0 = vector.load %arg1[%c0, %c0_0, %c0_1] : memref<1x8x32xf32, #tpu.memory_space<vmem>>, vector<1x8x32xf32>
    %1 = vector.shape_cast %0 : vector<1x8x32xf32> to vector<8x32xf32>
    %c0_2 = arith.constant 0 : index
    %c0_3 = arith.constant 0 : index
    %c0_4 = arith.constant 0 : index
    %2 = vector.load %arg2[%c0_2, %c0_3, %c0_4] : memref<1x8x32xf32, #tpu.memory_space<vmem>>, vector<1x8x32xf32>
    %3 = vector.shape_cast %2 : vector<1x8x32xf32> to vector<8x32xf32>
    %c0_5 = arith.constant 0 : index
    %c0_6 = arith.constant 0 : index
    %c0_7 = arith.constant 0 : index
    %4 = vector.load %arg3[%c0_5, %c0_6, %c0_7] : memref<1x8x32xf32, #tpu.memory_space<vmem>>, vector<1x8x32xf32>
    %5 = vector.shape_cast %4 : vector<1x8x32xf32> to vector<8x32xf32>
    %c0_8 = arith.constant 0 : index
    %c0_9 = arith.constant 0 : index
    %6 = vector.load %arg4[%c0_8, %c0_9] : memref<32x32xf32, #tpu.memory_space<vmem>>, vector<32x32xf32>
    %cst = arith.constant dense<0.000000e+00> : vector<8x32xf32>
    %7 = tpu.matmul %1, %6, %cst {dimension_numbers = #tpu.dot_dimension_numbers<[1], [0], [0], [1], [0, 0, 1, 1], [], []>} : vector<8x32xf32>, vector<32x32xf32>, vector<8x32xf32> -> vector<8x32xf32>
    %c0_10 = arith.constant 0 : index
    %c0_11 = arith.constant 0 : index
    %8 = vector.load %arg5[%c0_10, %c0_11] : memref<32x32xf32, #tpu.memory_space<vmem>>, vector<32x32xf32>
    %cst_12 = arith.constant dense<0.000000e+00> : vector<8x32xf32>
    %9 = tpu.matmul %3, %8, %cst_12 {dimension_numbers = #tpu.dot_dimension_numbers<[1], [0], [0], [1], [0, 0, 1, 1], [], []>} : vector<8x32xf32>, vector<32x32xf32>, vector<8x32xf32> -> vector<8x32xf32>
    %c0_13 = arith.constant 0 : index
    %c0_14 = arith.constant 0 : index
    %10 = vector.load %arg6[%c0_13, %c0_14] : memref<32x32xf32, #tpu.memory_space<vmem>>, vector<32x32xf32>
    %cst_15 = arith.constant dense<0.000000e+00> : vector<8x32xf32>
    %11 = tpu.matmul %5, %10, %cst_15 {dimension_numbers = #tpu.dot_dimension_numbers<[1], [0], [0], [1], [0, 0, 1, 1], [], []>} : vector<8x32xf32>, vector<32x32xf32>, vector<8x32xf32> -> vector<8x32xf32>
    %12 = vector.extract_strided_slice %7 {offsets = [0, 0], sizes = [8, 8], strides = [1, 1]} : vector<8x32xf32> to vector<8x8xf32>
    %13 = vector.extract_strided_slice %7 {offsets = [0, 8], sizes = [8, 8], strides = [1, 1]} : vector<8x32xf32> to vector<8x8xf32>
    %14 = vector.extract_strided_slice %7 {offsets = [0, 16], sizes = [8, 8], strides = [1, 1]} : vector<8x32xf32> to vector<8x8xf32>
    %15 = vector.extract_strided_slice %7 {offsets = [0, 24], sizes = [8, 8], strides = [1, 1]} : vector<8x32xf32> to vector<8x8xf32>
    %16 = vector.shape_cast %12 : vector<8x8xf32> to vector<1x8x8xf32>
    %17 = vector.shape_cast %13 : vector<8x8xf32> to vector<1x8x8xf32>
    %18 = vector.shape_cast %14 : vector<8x8xf32> to vector<1x8x8xf32>
    %19 = vector.shape_cast %15 : vector<8x8xf32> to vector<1x8x8xf32>
    %20 = tpu.concatenate %16, %17, %18, %19 in 0 : vector<1x8x8xf32>, vector<1x8x8xf32>, vector<1x8x8xf32>, vector<1x8x8xf32> -> vector<4x8x8xf32>
    %21 = vector.extract_strided_slice %9 {offsets = [0, 0], sizes = [8, 8], strides = [1, 1]} : vector<8x32xf32> to vector<8x8xf32>
    %22 = vector.extract_strided_slice %9 {offsets = [0, 8], sizes = [8, 8], strides = [1, 1]} : vector<8x32xf32> to vector<8x8xf32>
    %23 = vector.extract_strided_slice %9 {offsets = [0, 16], sizes = [8, 8], strides = [1, 1]} : vector<8x32xf32> to vector<8x8xf32>
    %24 = vector.extract_strided_slice %9 {offsets = [0, 24], sizes = [8, 8], strides = [1, 1]} : vector<8x32xf32> to vector<8x8xf32>
    %25 = vector.shape_cast %21 : vector<8x8xf32> to vector<1x8x8xf32>
    %26 = vector.shape_cast %22 : vector<8x8xf32> to vector<1x8x8xf32>
    %27 = vector.shape_cast %23 : vector<8x8xf32> to vector<1x8x8xf32>
    %28 = vector.shape_cast %24 : vector<8x8xf32> to vector<1x8x8xf32>
    %29 = tpu.concatenate %25, %26, %27, %28 in 0 : vector<1x8x8xf32>, vector<1x8x8xf32>, vector<1x8x8xf32>, vector<1x8x8xf32> -> vector<4x8x8xf32>
    %30 = vector.extract_strided_slice %11 {offsets = [0, 0], sizes = [8, 8], strides = [1, 1]} : vector<8x32xf32> to vector<8x8xf32>
    %31 = vector.extract_strided_slice %11 {offsets = [0, 8], sizes = [8, 8], strides = [1, 1]} : vector<8x32xf32> to vector<8x8xf32>
    %32 = vector.extract_strided_slice %11 {offsets = [0, 16], sizes = [8, 8], strides = [1, 1]} : vector<8x32xf32> to vector<8x8xf32>
    %33 = vector.extract_strided_slice %11 {offsets = [0, 24], sizes = [8, 8], strides = [1, 1]} : vector<8x32xf32> to vector<8x8xf32>
    %34 = vector.shape_cast %30 : vector<8x8xf32> to vector<1x8x8xf32>
    %35 = vector.shape_cast %31 : vector<8x8xf32> to vector<1x8x8xf32>
    %36 = vector.shape_cast %32 : vector<8x8xf32> to vector<1x8x8xf32>
    %37 = vector.shape_cast %33 : vector<8x8xf32> to vector<1x8x8xf32>
    %38 = tpu.concatenate %34, %35, %36, %37 in 0 : vector<1x8x8xf32>, vector<1x8x8xf32>, vector<1x8x8xf32>, vector<1x8x8xf32> -> vector<4x8x8xf32>
    "tpu.trace_start"() <{level = 10 : i32, message = "htk,hsk->hts"}> : () -> ()
    %cst_16 = arith.constant dense<0.000000e+00> : vector<4x8x8xf32>
    %39 = tpu.matmul %20, %29, %cst_16 {dimension_numbers = #tpu.dot_dimension_numbers<[2], [2], [1], [1], [0, 0, 0, 1, 1, 1], [0], [0]>} : vector<4x8x8xf32>, vector<4x8x8xf32>, vector<4x8x8xf32> -> vector<4x8x8xf32>
    "tpu.trace_stop"() : () -> ()
    %cst_17 = arith.constant 0.353553385 : f32
    %40 = vector.broadcast %cst_17 : f32 to vector<4x8x8xf32>
    %41 = arith.mulf %40, %39 : vector<4x8x8xf32>
    %cst_18 = arith.constant dense<0xFF800000> : vector<8x8xf32>
    %42 = vector.multi_reduction <maximumf>, %41, %cst_18 [0] : vector<4x8x8xf32> to vector<8x8xf32>
    %43 = vector.shape_cast %42 : vector<8x8xf32> to vector<1x8x8xf32>
    %44 = vector.broadcast %43 : vector<1x8x8xf32> to vector<4x8x8xf32>
    %45 = arith.subf %41, %44 : vector<4x8x8xf32>
    %46 = math.exp %45 : vector<4x8x8xf32>
    %cst_19 = arith.constant dense<0.000000e+00> : vector<8x8xf32>
    %47 = vector.multi_reduction <add>, %46, %cst_19 [0] : vector<4x8x8xf32> to vector<8x8xf32>
    %48 = vector.shape_cast %47 : vector<8x8xf32> to vector<1x8x8xf32>
    %49 = tpu.reciprocal %48 : vector<1x8x8xf32> -> vector<1x8x8xf32>
    %50 = vector.broadcast %49 : vector<1x8x8xf32> to vector<4x8x8xf32>
    %51 = arith.mulf %46, %50 : vector<4x8x8xf32>
    "tpu.trace_start"() <{level = 10 : i32, message = "hts,hsv->htv"}> : () -> ()
    %cst_20 = arith.constant dense<0.000000e+00> : vector<4x8x8xf32>
    %52 = tpu.matmul %51, %38, %cst_20 {dimension_numbers = #tpu.dot_dimension_numbers<[2], [1], [1], [2], [0, 0, 0, 1, 1, 2], [0], [0]>} : vector<4x8x8xf32>, vector<4x8x8xf32>, vector<4x8x8xf32> -> vector<4x8x8xf32>
    "tpu.trace_stop"() : () -> ()
    %53 = vector.extract_strided_slice %52 {offsets = [0, 0, 0], sizes = [1, 1, 8], strides = [1, 1, 1]} : vector<4x8x8xf32> to vector<1x1x8xf32>
    %54 = vector.shape_cast %53 : vector<1x1x8xf32> to vector<1x8xf32>
    %55 = vector.extract_strided_slice %52 {offsets = [0, 4, 0], sizes = [1, 1, 8], strides = [1, 1, 1]} : vector<4x8x8xf32> to vector<1x1x8xf32>
    %56 = vector.shape_cast %55 : vector<1x1x8xf32> to vector<1x8xf32>
    %57 = vector.extract_strided_slice %52 {offsets = [1, 0, 0], sizes = [1, 1, 8], strides = [1, 1, 1]} : vector<4x8x8xf32> to vector<1x1x8xf32>
    %58 = vector.shape_cast %57 : vector<1x1x8xf32> to vector<1x8xf32>
    %59 = vector.extract_strided_slice %52 {offsets = [1, 4, 0], sizes = [1, 1, 8], strides = [1, 1, 1]} : vector<4x8x8xf32> to vector<1x1x8xf32>
    %60 = vector.shape_cast %59 : vector<1x1x8xf32> to vector<1x8xf32>
    %61 = vector.extract_strided_slice %52 {offsets = [2, 0, 0], sizes = [1, 1, 8], strides = [1, 1, 1]} : vector<4x8x8xf32> to vector<1x1x8xf32>
    %62 = vector.shape_cast %61 : vector<1x1x8xf32> to vector<1x8xf32>
    %63 = vector.extract_strided_slice %52 {offsets = [2, 4, 0], sizes = [1, 1, 8], strides = [1, 1, 1]} : vector<4x8x8xf32> to vector<1x1x8xf32>
    %64 = vector.shape_cast %63 : vector<1x1x8xf32> to vector<1x8xf32>
    %65 = vector.extract_strided_slice %52 {offsets = [3, 0, 0], sizes = [1, 1, 8], strides = [1, 1, 1]} : vector<4x8x8xf32> to vector<1x1x8xf32>
    %66 = vector.shape_cast %65 : vector<1x1x8xf32> to vector<1x8xf32>
    %67 = vector.extract_strided_slice %52 {offsets = [3, 4, 0], sizes = [1, 1, 8], strides = [1, 1, 1]} : vector<4x8x8xf32> to vector<1x1x8xf32>
    %68 = vector.shape_cast %67 : vector<1x1x8xf32> to vector<1x8xf32>
    %69 = tpu.concatenate %54, %56, %58, %60, %62, %64, %66, %68 in 0 : vector<1x8xf32>, vector<1x8xf32>, vector<1x8xf32>, vector<1x8xf32>, vector<1x8xf32>, vector<1x8xf32>, vector<1x8xf32>, vector<1x8xf32> -> vector<8x8xf32>
    %70 = vector.extract_strided_slice %52 {offsets = [0, 1, 0], sizes = [1, 1, 8], strides = [1, 1, 1]} : vector<4x8x8xf32> to vector<1x1x8xf32>
    %71 = vector.shape_cast %70 : vector<1x1x8xf32> to vector<1x8xf32>
    %72 = vector.extract_strided_slice %52 {offsets = [0, 5, 0], sizes = [1, 1, 8], strides = [1, 1, 1]} : vector<4x8x8xf32> to vector<1x1x8xf32>
    %73 = vector.shape_cast %72 : vector<1x1x8xf32> to vector<1x8xf32>
    %74 = vector.extract_strided_slice %52 {offsets = [1, 1, 0], sizes = [1, 1, 8], strides = [1, 1, 1]} : vector<4x8x8xf32> to vector<1x1x8xf32>
    %75 = vector.shape_cast %74 : vector<1x1x8xf32> to vector<1x8xf32>
    %76 = vector.extract_strided_slice %52 {offsets = [1, 5, 0], sizes = [1, 1, 8], strides = [1, 1, 1]} : vector<4x8x8xf32> to vector<1x1x8xf32>
    %77 = vector.shape_cast %76 : vector<1x1x8xf32> to vector<1x8xf32>
    %78 = vector.extract_strided_slice %52 {offsets = [2, 1, 0], sizes = [1, 1, 8], strides = [1, 1, 1]} : vector<4x8x8xf32> to vector<1x1x8xf32>
    %79 = vector.shape_cast %78 : vector<1x1x8xf32> to vector<1x8xf32>
    %80 = vector.extract_strided_slice %52 {offsets = [2, 5, 0], sizes = [1, 1, 8], strides = [1, 1, 1]} : vector<4x8x8xf32> to vector<1x1x8xf32>
    %81 = vector.shape_cast %80 : vector<1x1x8xf32> to vector<1x8xf32>
    %82 = vector.extract_strided_slice %52 {offsets = [3, 1, 0], sizes = [1, 1, 8], strides = [1, 1, 1]} : vector<4x8x8xf32> to vector<1x1x8xf32>
    %83 = vector.shape_cast %82 : vector<1x1x8xf32> to vector<1x8xf32>
    %84 = vector.extract_strided_slice %52 {offsets = [3, 5, 0], sizes = [1, 1, 8], strides = [1, 1, 1]} : vector<4x8x8xf32> to vector<1x1x8xf32>
    %85 = vector.shape_cast %84 : vector<1x1x8xf32> to vector<1x8xf32>
    %86 = tpu.concatenate %71, %73, %75, %77, %79, %81, %83, %85 in 0 : vector<1x8xf32>, vector<1x8xf32>, vector<1x8xf32>, vector<1x8xf32>, vector<1x8xf32>, vector<1x8xf32>, vector<1x8xf32>, vector<1x8xf32> -> vector<8x8xf32>
    %87 = vector.extract_strided_slice %52 {offsets = [0, 2, 0], sizes = [1, 1, 8], strides = [1, 1, 1]} : vector<4x8x8xf32> to vector<1x1x8xf32>
    %88 = vector.shape_cast %87 : vector<1x1x8xf32> to vector<1x8xf32>
    %89 = vector.extract_strided_slice %52 {offsets = [0, 6, 0], sizes = [1, 1, 8], strides = [1, 1, 1]} : vector<4x8x8xf32> to vector<1x1x8xf32>
    %90 = vector.shape_cast %89 : vector<1x1x8xf32> to vector<1x8xf32>
    %91 = vector.extract_strided_slice %52 {offsets = [1, 2, 0], sizes = [1, 1, 8], strides = [1, 1, 1]} : vector<4x8x8xf32> to vector<1x1x8xf32>
    %92 = vector.shape_cast %91 : vector<1x1x8xf32> to vector<1x8xf32>
    %93 = vector.extract_strided_slice %52 {offsets = [1, 6, 0], sizes = [1, 1, 8], strides = [1, 1, 1]} : vector<4x8x8xf32> to vector<1x1x8xf32>
    %94 = vector.shape_cast %93 : vector<1x1x8xf32> to vector<1x8xf32>
    %95 = vector.extract_strided_slice %52 {offsets = [2, 2, 0], sizes = [1, 1, 8], strides = [1, 1, 1]} : vector<4x8x8xf32> to vector<1x1x8xf32>
    %96 = vector.shape_cast %95 : vector<1x1x8xf32> to vector<1x8xf32>
    %97 = vector.extract_strided_slice %52 {offsets = [2, 6, 0], sizes = [1, 1, 8], strides = [1, 1, 1]} : vector<4x8x8xf32> to vector<1x1x8xf32>
    %98 = vector.shape_cast %97 : vector<1x1x8xf32> to vector<1x8xf32>
    %99 = vector.extract_strided_slice %52 {offsets = [3, 2, 0], sizes = [1, 1, 8], strides = [1, 1, 1]} : vector<4x8x8xf32> to vector<1x1x8xf32>
    %100 = vector.shape_cast %99 : vector<1x1x8xf32> to vector<1x8xf32>
    %101 = vector.extract_strided_slice %52 {offsets = [3, 6, 0], sizes = [1, 1, 8], strides = [1, 1, 1]} : vector<4x8x8xf32> to vector<1x1x8xf32>
    %102 = vector.shape_cast %101 : vector<1x1x8xf32> to vector<1x8xf32>
    %103 = tpu.concatenate %88, %90, %92, %94, %96, %98, %100, %102 in 0 : vector<1x8xf32>, vector<1x8xf32>, vector<1x8xf32>, vector<1x8xf32>, vector<1x8xf32>, vector<1x8xf32>, vector<1x8xf32>, vector<1x8xf32> -> vector<8x8xf32>
    %104 = vector.extract_strided_slice %52 {offsets = [0, 3, 0], sizes = [1, 1, 8], strides = [1, 1, 1]} : vector<4x8x8xf32> to vector<1x1x8xf32>
    %105 = vector.shape_cast %104 : vector<1x1x8xf32> to vector<1x8xf32>
    %106 = vector.extract_strided_slice %52 {offsets = [0, 7, 0], sizes = [1, 1, 8], strides = [1, 1, 1]} : vector<4x8x8xf32> to vector<1x1x8xf32>
    %107 = vector.shape_cast %106 : vector<1x1x8xf32> to vector<1x8xf32>
    %108 = vector.extract_strided_slice %52 {offsets = [1, 3, 0], sizes = [1, 1, 8], strides = [1, 1, 1]} : vector<4x8x8xf32> to vector<1x1x8xf32>
    %109 = vector.shape_cast %108 : vector<1x1x8xf32> to vector<1x8xf32>
    %110 = vector.extract_strided_slice %52 {offsets = [1, 7, 0], sizes = [1, 1, 8], strides = [1, 1, 1]} : vector<4x8x8xf32> to vector<1x1x8xf32>
    %111 = vector.shape_cast %110 : vector<1x1x8xf32> to vector<1x8xf32>
    %112 = vector.extract_strided_slice %52 {offsets = [2, 3, 0], sizes = [1, 1, 8], strides = [1, 1, 1]} : vector<4x8x8xf32> to vector<1x1x8xf32>
    %113 = vector.shape_cast %112 : vector<1x1x8xf32> to vector<1x8xf32>
    %114 = vector.extract_strided_slice %52 {offsets = [2, 7, 0], sizes = [1, 1, 8], strides = [1, 1, 1]} : vector<4x8x8xf32> to vector<1x1x8xf32>
    %115 = vector.shape_cast %114 : vector<1x1x8xf32> to vector<1x8xf32>
    %116 = vector.extract_strided_slice %52 {offsets = [3, 3, 0], sizes = [1, 1, 8], strides = [1, 1, 1]} : vector<4x8x8xf32> to vector<1x1x8xf32>
    %117 = vector.shape_cast %116 : vector<1x1x8xf32> to vector<1x8xf32>
    %118 = vector.extract_strided_slice %52 {offsets = [3, 7, 0], sizes = [1, 1, 8], strides = [1, 1, 1]} : vector<4x8x8xf32> to vector<1x1x8xf32>
    %119 = vector.shape_cast %118 : vector<1x1x8xf32> to vector<1x8xf32>
    %120 = tpu.concatenate %105, %107, %109, %111, %113, %115, %117, %119 in 0 : vector<1x8xf32>, vector<1x8xf32>, vector<1x8xf32>, vector<1x8xf32>, vector<1x8xf32>, vector<1x8xf32>, vector<1x8xf32>, vector<1x8xf32> -> vector<8x8xf32>
    %121 = tpu.concatenate %69, %86, %103, %120 in 1 : vector<8x8xf32>, vector<8x8xf32>, vector<8x8xf32>, vector<8x8xf32> -> vector<8x32xf32>
    %c0_21 = arith.constant 0 : index
    %c0_22 = arith.constant 0 : index
    %122 = vector.load %arg7[%c0_21, %c0_22] : memref<32x32xf32, #tpu.memory_space<vmem>>, vector<32x32xf32>
    %cst_23 = arith.constant dense<0.000000e+00> : vector<8x32xf32>
    %123 = tpu.matmul %121, %122, %cst_23 {dimension_numbers = #tpu.dot_dimension_numbers<[1], [0], [0], [1], [0, 0, 1, 1], [], []>} : vector<8x32xf32>, vector<32x32xf32>, vector<8x32xf32> -> vector<8x32xf32>
    %c0_24 = arith.constant 0 : index
    %c0_25 = arith.constant 0 : index
    %c0_26 = arith.constant 0 : index
    %124 = vector.load %arg8[%c0_24, %c0_25, %c0_26] : memref<1x8x32xf32, #tpu.memory_space<vmem>>, vector<1x8x32xf32>
    %125 = vector.shape_cast %124 : vector<1x8x32xf32> to vector<8x32xf32>
    %126 = vector.shape_cast %123 : vector<8x32xf32> to vector<1x8x32xf32>
    tpu.vector_store %arg8[%c0_24, %c0_25, %c0_26], %126 {strides = array<i32>} : memref<1x8x32xf32, #tpu.memory_space<vmem>>, vector<1x8x32xf32>,
    return
  }
  func.func @transform_0(%arg0: i32) -> (i32, i32, i32) {
    %c0_i32 = arith.constant 0 : i32
    %c0_i32_0 = arith.constant 0 : i32
    %c0_i32_1 = arith.constant 0 : i32
    return %arg0, %c0_i32, %c0_i32_0 : i32, i32, i32
  }
  func.func @transform_1(%arg0: i32) -> (i32, i32, i32) {
    %c0_i32 = arith.constant 0 : i32
    %c0_i32_0 = arith.constant 0 : i32
    %c0_i32_1 = arith.constant 0 : i32
    return %arg0, %c0_i32, %c0_i32_0 : i32, i32, i32
  }
  func.func @transform_2(%arg0: i32) -> (i32, i32, i32) {
    %c0_i32 = arith.constant 0 : i32
    %c0_i32_0 = arith.constant 0 : i32
    %c0_i32_1 = arith.constant 0 : i32
    return %arg0, %c0_i32, %c0_i32_0 : i32, i32, i32
  }
  func.func @transform_3(%arg0: i32) -> (i32, i32) {
    %c0_i32 = arith.constant 0 : i32
    %c0_i32_0 = arith.constant 0 : i32
    %c0_i32_1 = arith.constant 0 : i32
    return %c0_i32, %c0_i32_0 : i32, i32
  }
  func.func @transform_4(%arg0: i32) -> (i32, i32) {
    %c0_i32 = arith.constant 0 : i32
    %c0_i32_0 = arith.constant 0 : i32
    %c0_i32_1 = arith.constant 0 : i32
    return %c0_i32, %c0_i32_0 : i32, i32
  }
  func.func @transform_5(%arg0: i32) -> (i32, i32) {
    %c0_i32 = arith.constant 0 : i32
    %c0_i32_0 = arith.constant 0 : i32
    %c0_i32_1 = arith.constant 0 : i32
    return %c0_i32, %c0_i32_0 : i32, i32
  }
  func.func @transform_6(%arg0: i32) -> (i32, i32) {
    %c0_i32 = arith.constant 0 : i32
    %c0_i32_0 = arith.constant 0 : i32
    %c0_i32_1 = arith.constant 0 : i32
    return %c0_i32, %c0_i32_0 : i32, i32
  }
  func.func @transform_7(%arg0: i32) -> (i32, i32, i32) {
    %c0_i32 = arith.constant 0 : i32
    %c0_i32_0 = arith.constant 0 : i32
    %c0_i32_1 = arith.constant 0 : i32
    return %arg0, %c0_i32, %c0_i32_0 : i32, i32, i32
  }
}

</mosaic_0001>

<bundles_post_ra>
// kernel: tpu_custom_call.1
= control target key start
LH: loop header
LB: loop body
LE: loop exit
PB: predicated region body
PF: predicated region fallthrough
CT: control target
= control target key end

     0   :  { %s2756_s0 = inlined_call_operand.hbm [shape: f32[2,8,32], index: 0, kind: input, shape index: {}]   ;;  %s2757_s1 = inlined_call_operand.hbm [shape: f32[2,8,32], index: 1, kind: input, shape index: {}]   ;;  %s2758_s2 = inlined_call_operand.hbm [shape: f32[2,8,32], index: 2, kind: input, shape index: {}]   ;;  %s2759_s3 = inlined_call_operand.hbm [shape: f32[32,32], index: 3, kind: input, shape index: {}]   ;;  %s2760_s4 = inlined_call_operand.hbm [shape: f32[32,32], index: 4, kind: input, shape index: {}]   ;;  %s2761_s5 = inlined_call_operand.hbm [shape: f32[32,32], index: 5, kind: input, shape index: {}]   ;;  %s2762_s6 = inlined_call_operand.hbm [shape: f32[32,32], index: 6, kind: input, shape index: {}]   ;;  %s2763_s7 = inlined_call_operand.hbm [shape: f32[2,8,32], index: 7, kind: output, shape index: {}]  }
   0x1   :  { %2787 = sst [smem:[#allocation25_spill]] %s2757_s1 }
   0x2   :  { %2788 = sst [smem:[#allocation26_spill]] %s2759_s3 }
   0x3   :  { %2789 = sst [smem:[#allocation27_spill]] %s2761_s5 }
   0x4   :  { %2790 = sst [smem:[#allocation28_spill]] %s2763_s7 }
   0x5   :  { %12 = vsyncpa [#allocation3], 0 }
   0x6   :  { %14 = vsyncpa [#allocation3 + $0x1], 0 }
   0x7   :  { %15 = vsyncpa [#allocation6], 0 }
   0x8   :  { %17 = vsyncpa [#allocation6 + $0x1], 0 }
   0x9   :  { %18 = vsyncpa [#allocation9], 0 }
   0xa   :  { %19 = vsyncpa [#allocation12], 0 }
   0xb   :  { %20 = vsyncpa [#allocation4], 0 }
   0xc   :  { %22 = vsyncpa [#allocation4 + $0x1], 0  ;;  %s2298_s24 = smov 0   ;;  %s2300_s25 = smov 0  }
   0xd   :  { %s2302_s26 = smov 0   ;;  %s2304_s27 = smov 0  }
   0xe LB: > { %2791 = sst [smem:[#allocation20_spill]] %s2225_s24  ;;  %s2239_s28 = smov [#allocation8]   ;;  %s2237_s27 = sphi %s2304_s27, %s2828_s27   ;;  %s2233_s26 = sphi %s2302_s26, %s2832_s26   ;;  %s2229_s25 = sphi %s2300_s25, %s2831_s25   ;;  %s2225_s24 = sphi %s2298_s24, %s2830_s24  }
   0xf   : > { %2792 = sst [smem:[#allocation21_spill]] %s2237_s27  ;;  %s233_s29 = sshll.u32 %s2239_s28, 4  ;;  %s2324_s29 = int_to_ptr.vmem [resolvable:$true] %s233_s29 }
  0x10   : > { %s2319_s30 = sadd.s32 4294967295, %s2237_s27   ;;  %p1654_p0 = scmp.ge.s32.totalorder %s2237_s27, 1 }
  0x11   : > { %p2773_p1 = scmp.eq.s32.totalorder %s2319_s30, 0  ;;  %p221_p2 = scmp.lt.s32.totalorder %s2237_s27, 3 }
  0x12   : > { %s2240_s9 = smov [#allocation11]   ;;  %s2795_s3 = sld [smem:[#allocation26_spill]] }
  0x13   : > { %p2326_p3 = pnand %p1654_p0, %p221_p2  ;;  %s259_s10 = sshll.u32 %s2240_s9, 4  ;;  %s2339_s10 = int_to_ptr.vmem [resolvable:$true] %s259_s10 }
  0x15   : > { %s2793_s8 = scalar_select %p2326_p3, 1, 0 }
  0x16   : > { %p1863_p5 = pneg %p2326_p3 }
  0x18   : > { %p2335_p6 = pnand %p1863_p5, %p2773_p1  ;;  %s1957_s14 = scalar_lea.hbm %s2795_s3, 512 }
  0x19   : > { %p1958_p7 = scmp.ne.s32.totalorder %s2795_s3, %s1957_s14  ;;  %p1964_p11 = scmp.lt.u32.totalorder %s1957_s14, %s2795_s3 }
  0x1a   : > { %s2794_s11 = scalar_select %p2335_p6, 1, 0 }
  0x1b   : > { %p2349_p8 = pneg %p2335_p6 }
  0x1d   : > { %s2796_s17 = scalar_select %p2349_p8, 1, 0 }
  0x1e   : > { %p1960_p9 = pnand %p2349_p8, %p1958_p7 }
  0x20   : > { %p1961_p10 = pneg %p1960_p9 }
  0x22   : > { %p1966_p12 = pnand %p1964_p11, %p1961_p10 }
  0x24   : > { %1969 = shalt.err (!%p1966_p12)
}
  0x25   : > { %s1970_s20 = scalar_lea.vmem %s2324_s29, 512  ;;  %p1978_p5 = scmp.lt.s32.totalorder %s2324_s29, %s2324_s29 }
  0x26   : > { %p1971_p13 = scmp.ne.s32.totalorder %s2324_s29, %s1970_s20  ;;  %p1979_p4 = scmp.lt.s32.totalorder %s1970_s20, %s1970_s20 }
  0x28   : > { %p1973_p0 = pnand %p1971_p13, %p2349_p8  ;;  %p1980_p7 = por %p1979_p4, %p1978_p5 }
  0x2a   : > { %p1974_p2 = pneg %p1973_p0 }
  0x2c   : > { %p1981_p9 = pnand %p1980_p7, %p1974_p2 }
  0x2e   : > { %1984 = shalt.err (!%p1981_p9)
}
  0x2f   : > { %s2766_s21 = smov 128   ;;  %s2768_s22 = smov 8  }
  0x30   : > { %1866 = dma.hbm_to_vmem [thread:$0]  (!%p2335_p6), %s2795_s3, 512, %s2324_s29, [#allocation9], %s2766_s21, %s2766_s21, %s2768_s22  }
  0x31   : > { %s2797_s5 = sld [smem:[#allocation27_spill]] }
  0x37   : > { %s1985_s13 = scalar_lea.hbm %s2797_s5, 512 }
  0x38   : > { %p1986_p4 = scmp.ne.s32.totalorder %s2797_s5, %s1985_s13  ;;  %p1992_p12 = scmp.lt.u32.totalorder %s1985_s13, %s2797_s5 }
  0x3a   : > { %p1988_p10 = pnand %p1986_p4, %p2349_p8 }
  0x3c   : > { %p1989_p11 = pneg %p1988_p10 }
  0x3e   : > { %p1994_p13 = pnand %p1992_p12, %p1989_p11 }
  0x40   : > { %1997 = shalt.err (!%p1994_p13)
}
  0x41   : > { %s1998_s29 = scalar_lea.vmem %s2339_s10, 512  ;;  %p2006_p7 = scmp.lt.s32.totalorder %s2339_s10, %s2339_s10 }
  0x42   : > { %p1999_p0 = scmp.ne.s32.totalorder %s2339_s10, %s1998_s29  ;;  %p2007_p9 = scmp.lt.s32.totalorder %s1998_s29, %s1998_s29 }
  0x44   : > { %p2001_p2 = pnand %p1999_p0, %p2349_p8  ;;  %p2008_p4 = por %p2007_p9, %p2006_p7 }
  0x46   : > { %p2002_p5 = pneg %p2001_p2 }
  0x48   : > { %p2009_p10 = pnand %p2008_p4, %p2002_p5 }
  0x4a   : > { %2012 = shalt.err (!%p2009_p10)
}
  0x4b   : > { %1872 = dma.hbm_to_vmem [thread:$0]  (!%p2335_p6), %s2797_s5, 512, %s2339_s10, [#allocation12], %s2766_s21, %s2766_s21, %s2768_s22  }
  0x4c   : > { %s1653_s23 = sadd.s32 4294967294, %s2237_s27   ;;  %s2401_s28 = sadd.s32 1, %s2237_s27  }
  0x4d   : > { %2798 = sst [smem:[#allocation22_spill]] %s2401_s28  ;;  %s32_s9 = ssub.s32 %s2237_s27, %s2401_s28 }
  0x4e   : > { %s35_s12 = sadd.s32 1, %s2233_s26  ;;  %p33_p11 = scmp.eq.s32.totalorder %s32_s9, 0 }
  0x4f   : > { %p42_p12 = scmp.ne.s32.totalorder %s2233_s26, %s2229_s25  ;;  %p43_p13 = scmp.eq.s32.totalorder %s2237_s27, 0 }
  0x50   : > { %p48_p0 = scmp.ne.s32.totalorder %s2229_s25, %s2225_s24  ;;  %p208_p7 = scmp.eq.s32.totalorder %s2319_s30, 1 }
  0x51   : > { %s2412_s13 = scalar_select %p33_p11, %s2233_s26, %s35_s12  }
  0x52   : > { %p44_p2 = por %p43_p13, %p42_p12  ;;  %p2416_p5 = por %p2773_p1, %p48_p0 }
  0x53   : > { %2799 = sst [smem:[#allocation23_spill]] %s2412_s13  ;;  %p214_p9 = scmp.eq.s32.totalorder %s1653_s23, 1 }
  0x54   : > { %s2800_s14 = scalar_select %p2416_p5, 1, 0 }
  0x55   : > { %p1894_p4 = scmp.lt.s32.totalorder %s2237_s27, 2  ;;  %s2765_s10 = sand.u32 1, %s2233_s26  }
  0x56   : > { %p2423_p10 = por %p208_p7, %p42_p12  ;;  %p2427_p3 = por %p214_p9, %p48_p0 }
  0x57   : > { %s2433_s18 = sshll.u32 %s2765_s10, 3  ;;  %s2436_s29 = sshll.u32 %s2237_s27, 7 }
  0x58   : > { %s2801_s15 = scalar_select %p2423_p10, 1, 0 }
  0x59   : > { %s2802_s16 = scalar_select %p2427_p3, 1, 0 }
  0x5a   : > { %p2438_p11 = pnand %p1894_p4, %p44_p2  ;;  %s304_s20 = sand.u32 1, %s2237_s27  }
  0x5b   : > { %2803 = sst [smem:[#allocation24_spill]] %s2802_s16  ;;  %s308_s10 = scalar_lea.vmem [#allocation5], %s2433_s18 }
  0x5c   : > { %s2804_s19 = scalar_select %p2438_p11, 1, 0 }
  0x5d   : > { %s2805_s1 = sld [smem:[#allocation25_spill]]  ;;  %s315_s21 = sshll.u32 %s308_s10, 4  ;;  %s2450_s21 = int_to_ptr.vmem [resolvable:$true] %s315_s21 }
  0x5e   : > { %s2243_s22 = smov [#allocation10]   ;;  %s2454_s5 = scalar_lea.sflag [#allocation6], %s304_s20 }
  0x5f   : > { %s2452_s3 = sshll.u32 %s2243_s22, 4  ;;  %p2460_p13 = pneg %p2438_p11  ;;  %s247_s3 = int_to_ptr.vmem [resolvable:$true] %s2452_s3 }
  0x61   : > { %s2806_s23 = scalar_select %p2460_p13, 1, 0 }
  0x63   : > { %s2447_s12 = scalar_lea.hbm %s2805_s1, %s2436_s29  ;;  %s2018_s28 = scalar_lea.hbm %s2805_s1, 256 }
  0x64   : > { %s2013_s13 = scalar_lea.hbm %s2447_s12, 128  ;;  %p2019_p7 = scmp.lt.u32.totalorder %s2447_s12, %s2805_s1 }
  0x65   : > { %p2014_p12 = scmp.ne.s32.totalorder %s2447_s12, %s2013_s13  ;;  %p2020_p9 = scmp.lt.u32.totalorder %s2018_s28, %s2013_s13 }
  0x66   : > { %p2022_p1 = scmp.lt.u32.totalorder %s2013_s13, %s2447_s12 }
  0x67   : > { %p2016_p0 = pnand %p2460_p13, %p2014_p12  ;;  %p2021_p4 = por %p2020_p9, %p2019_p7 }
  0x69   : > { %p2017_p2 = pneg %p2016_p0  ;;  %p2023_p3 = por %p2022_p1, %p2021_p4 }
  0x6b   : > { %p2024_p10 = pnand %p2023_p3, %p2017_p2 }
  0x6d   : > { %2027 = shalt.err (!%p2024_p10)
}
  0x6e   : > { %s2028_s20 = scalar_lea.vmem %s2450_s21, 128  ;;  %s2244_s9 = smov [#allocation5]  }
  0x6f   : > { %p2029_p12 = scmp.ne.s32.totalorder %s2450_s21, %s2028_s20  ;;  %s2033_s10 = sshll.u32 %s2244_s9, 4  ;;  %s2034_s10 = int_to_ptr.vmem [resolvable:$false] %s2033_s10 }
  0x70   : > { %s2035_s27 = scalar_lea.vmem %s2034_s10, 256  ;;  %p2036_p6 = scmp.lt.s32.totalorder %s2450_s21, %s2034_s10 }
  0x71   : > { %p2031_p0 = pnand %p2029_p12, %p2460_p13  ;;  %p2037_p8 = scmp.lt.s32.totalorder %s2035_s27, %s2028_s20 }
  0x73   : > { %p2032_p5 = pneg %p2031_p0  ;;  %p2038_p7 = por %p2037_p8, %p2036_p6 }
  0x75   : > { %p2039_p9 = pnand %p2038_p7, %p2032_p5 }
  0x77   : > { %2042 = shalt.err (!%p2039_p9)
}
  0x78   : > { %1882 = dma.hbm_to_vmem [thread:$0]  (!%p2438_p11), %s2447_s12, 128, %s2450_s21, %s2454_s5  }
  0x79   : > { %s2043_s22 = scalar_lea.hbm %s2760_s4, 512  ;;  %p2807_p3 = scmp.ne.s32.totalorder %s2796_s17, 0 }
  0x7a   : > { %p2044_p1 = scmp.ne.s32.totalorder %s2760_s4, %s2043_s22  ;;  %p2050_p5 = scmp.lt.u32.totalorder %s2043_s22, %s2760_s4 }
  0x7c   : > { %p2046_p6 = pnand %p2044_p1, %p2807_p3 }
  0x7e   : > { %p2047_p8 = pneg %p2046_p6 }
  0x80   : > { %p2052_p10 = pnand %p2050_p5, %p2047_p8 }
  0x82   : > { %2055 = shalt.err (!%p2052_p10)
}
  0x83   : > { %s2056_s27 = scalar_lea.vmem %s247_s3, 512  ;;  %p2064_p0 = scmp.lt.s32.totalorder %s247_s3, %s247_s3 }
  0x84   : > { %p2057_p2 = scmp.ne.s32.totalorder %s247_s3, %s2056_s27  ;;  %p2065_p7 = scmp.lt.s32.totalorder %s2056_s27, %s2056_s27 }
  0x86   : > { %p2059_p4 = pnand %p2057_p2, %p2807_p3  ;;  %p2066_p9 = por %p2065_p7, %p2064_p0 }
  0x88   : > { %p2060_p12 = pneg %p2059_p4 }
  0x8a   : > { %p2067_p11 = pnand %p2066_p9, %p2060_p12 }
  0x8c   : > { %2070 = shalt.err (!%p2067_p11)
}
  0x8d   : > { %p2808_p1 = scmp.ne.s32.totalorder %s2794_s11, 0  ;;  %s2809_s1 = smov 8  }
  0x8e   : > { %s2810_s21 = smov 128   ;;  %s2245_s13 = smov [#allocation13]  }
  0x8f   : > { %1869 = dma.hbm_to_vmem [thread:$0]  (!%p2808_p1), %s2760_s4, 512, %s247_s3, [#allocation9], %s2810_s21, %s2810_s21, %s2809_s1  }
  0x90   : > { %s272_s22 = sshll.u32 %s2245_s13, 4  ;;  %s2071_s10 = scalar_lea.hbm %s2762_s6, 512  ;;  %s273_s22 = int_to_ptr.vmem [resolvable:$true] %s272_s22 }
  0x91   : > { %p2072_p11 = scmp.ne.s32.totalorder %s2762_s6, %s2071_s10  ;;  %p2078_p5 = scmp.lt.u32.totalorder %s2071_s10, %s2762_s6 }
  0x93   : > { %p2074_p6 = pnand %p2072_p11, %p2807_p3 }
  0x95   : > { %p2075_p8 = pneg %p2074_p6 }
  0x97   : > { %p2080_p10 = pnand %p2078_p5, %p2075_p8 }
  0x99   : > { %2083 = shalt.err (!%p2080_p10)
}
  0x9a   : > { %s2084_s3 = scalar_lea.vmem %s273_s22, 512  ;;  %p2092_p0 = scmp.lt.s32.totalorder %s273_s22, %s273_s22 }
  0x9b   : > { %p2085_p2 = scmp.ne.s32.totalorder %s273_s22, %s2084_s3  ;;  %p2093_p7 = scmp.lt.s32.totalorder %s2084_s3, %s2084_s3 }
  0x9d   : > { %p2087_p4 = pnand %p2085_p2, %p2807_p3  ;;  %p2094_p9 = por %p2093_p7, %p2092_p0 }
  0x9f   : > { %p2088_p12 = pneg %p2087_p4 }
  0xa1   : > { %p2095_p13 = pnand %p2094_p9, %p2088_p12 }
  0xa3   : > { %2098 = shalt.err (!%p2095_p13)
}
  0xa4   : > { %1875 = dma.hbm_to_vmem [thread:$0]  (!%p2808_p1), %s2762_s6, 512, %s273_s22, [#allocation12], %s2810_s21, %s2810_s21, %s2809_s1  }
  0xa5   : > { %s2531_s12 = scalar_lea.hbm %s2756_s0, %s2436_s29  ;;  %s290_s11 = scalar_lea.vmem [#allocation2], %s2433_s18 }
  0xa6   : > { %s297_s28 = sshll.u32 %s290_s11, 4  ;;  %s2811_s13 = sand.u32 1, %s2233_s26   ;;  %s298_s28 = int_to_ptr.vmem [resolvable:$true] %s297_s28 }
  0xa7   : > { %s287_s9 = scalar_lea.sflag [#allocation3], %s2811_s13  ;;  %s2099_s20 = scalar_lea.hbm %s2531_s12, 128 }
  0xa8   : > { %p2100_p13 = scmp.ne.s32.totalorder %s2531_s12, %s2099_s20  ;;  %p2812_p3 = scmp.ne.s32.totalorder %s2806_s23, 0 }
  0xa9   : > { %s2104_s22 = scalar_lea.hbm %s2756_s0, 256  ;;  %p2105_p1 = scmp.lt.u32.totalorder %s2531_s12, %s2756_s0 }
  0xaa   : > { %p2102_p11 = pnand %p2100_p13, %p2812_p3  ;;  %p2106_p8 = scmp.lt.u32.totalorder %s2104_s22, %s2099_s20 }
  0xab   : > { %p2108_p10 = scmp.lt.u32.totalorder %s2099_s20, %s2531_s12 }
  0xac   : > { %p2103_p6 = pneg %p2102_p11  ;;  %p2107_p5 = por %p2106_p8, %p2105_p1 }
  0xae   : > { %p2109_p2 = por %p2108_p10, %p2107_p5 }
  0xb0   : > { %p2110_p4 = pnand %p2109_p2, %p2103_p6 }
  0xb2   : > { %2113 = shalt.err (!%p2110_p4)
}
  0xb3   : > { %s2114_s3 = scalar_lea.vmem %s298_s28, 128  ;;  %s2246_s7 = smov [#allocation2]  }
  0xb4   : > { %p2115_p12 = scmp.ne.s32.totalorder %s298_s28, %s2114_s3  ;;  %s2119_s24 = sshll.u32 %s2246_s7, 4  ;;  %s2120_s24 = int_to_ptr.vmem [resolvable:$false] %s2119_s24 }
  0xb5   : > { %s2121_s17 = scalar_lea.vmem %s2120_s24, 256  ;;  %p2122_p9 = scmp.lt.s32.totalorder %s298_s28, %s2120_s24 }
  0xb6   : > { %p2117_p0 = pnand %p2115_p12, %p2812_p3  ;;  %p2123_p13 = scmp.lt.s32.totalorder %s2121_s17, %s2114_s3 }
  0xb8   : > { %p2118_p7 = pneg %p2117_p0  ;;  %p2124_p11 = por %p2123_p13, %p2122_p9 }
  0xba   : > { %p2125_p1 = pnand %p2124_p11, %p2118_p7 }
  0xbc   : > { %2128 = shalt.err (!%p2125_p1)
}
  0xbd   : > { %p2813_p8 = scmp.ne.s32.totalorder %s2804_s19, 0  ;;  %s2557_s13 = scalar_lea.hbm %s2758_s2, %s2436_s29 }
  0xbe   : > { %s326_s20 = scalar_lea.vmem [#allocation7], %s2433_s18  ;;  %s2129_s21 = scalar_lea.hbm %s2557_s13, 128 }
  0xbf   : > { %1879 = dma.hbm_to_vmem [thread:$0]  (!%p2813_p8), %s2531_s12, 128, %s298_s28, %s287_s9  }
  0xc0   : > { %s333_s1 = sshll.u32 %s326_s20, 4  ;;  %p2130_p6 = scmp.ne.s32.totalorder %s2557_s13, %s2129_s21  ;;  %s334_s1 = int_to_ptr.vmem [resolvable:$true] %s333_s1 }
  0xc1   : > { %s2134_s12 = scalar_lea.hbm %s2758_s2, 256  ;;  %p2135_p2 = scmp.lt.u32.totalorder %s2557_s13, %s2758_s2 }
  0xc2   : > { %p2132_p5 = pnand %p2130_p6, %p2812_p3  ;;  %p2136_p4 = scmp.lt.u32.totalorder %s2134_s12, %s2129_s21 }
  0xc3   : > { %p2138_p0 = scmp.lt.u32.totalorder %s2129_s21, %s2557_s13 }
  0xc4   : > { %p2133_p10 = pneg %p2132_p5  ;;  %p2137_p12 = por %p2136_p4, %p2135_p2 }
  0xc6   : > { %p2139_p7 = por %p2138_p0, %p2137_p12 }
  0xc8   : > { %p2140_p9 = pnand %p2139_p7, %p2133_p10 }
  0xca   : > { %2143 = shalt.err (!%p2140_p9)
}
  0xcb   : > { %s2144_s18 = scalar_lea.vmem %s334_s1, 128  ;;  %s2247_s29 = smov [#allocation7]  }
  0xcc   : > { %p2145_p13 = scmp.ne.s32.totalorder %s334_s1, %s2144_s18  ;;  %s2149_s27 = sshll.u32 %s2247_s29, 4  ;;  %s2150_s27 = int_to_ptr.vmem [resolvable:$false] %s2149_s27 }
  0xcd   : > { %s2151_s3 = scalar_lea.vmem %s2150_s27, 256  ;;  %p2152_p6 = scmp.lt.s32.totalorder %s334_s1, %s2150_s27 }
  0xce   : > { %p2147_p11 = pnand %p2145_p13, %p2812_p3  ;;  %p2153_p5 = scmp.lt.s32.totalorder %s2151_s3, %s2144_s18 }
  0xd0   : > { %p2148_p1 = pneg %p2147_p11  ;;  %p2154_p8 = por %p2153_p5, %p2152_p6 }
  0xd2   : > { %p2155_p2 = pnand %p2154_p8, %p2148_p1 }
  0xd4   : > { %2158 = shalt.err (!%p2155_p2)
}
  0xd5   : > { %p2814_p4 = scmp.ne.s32.totalorder %s2804_s19, 0  ;;  %p2815_p10 = scmp.ne.s32.totalorder %s2793_s8, 0 }
  0xd6   : > { %s2581_s23 = sand.u32 (!%p2815_p10), 1, %s2229_s25   ;;  %p2816_p3 = scmp.ne.s32.totalorder (!%p2815_p10), %s2800_s14, 0 }
  0xd7   : > { %1885 = dma.hbm_to_vmem [thread:$0]  (!%p2814_p4), %s2557_s13, 128, %s334_s1, %s2454_s5  }
  0xd8   : > { %342 = sbr.rel (%p2815_p10) target bundleno = 1408 (0x580), region = 48  ;;  %s2584_s7 = sshll.u32 (!%p2815_p10), %s2581_s23, 3 }
  0xd9   : > { %s345_s24 = scalar_lea.sflag (!%p2815_p10), [#allocation3], %s2581_s23  ;;  %s348_s17 = scalar_lea.vmem (!%p2815_p10), [#allocation2], %s2584_s7 }
  0xdf   : > { %2204 = dma.done.wait (%p2816_p3), %s345_s24, 128  }
  0xe0   : > { %2206 = vsyncadd (%p2816_p3), %s345_s24, 4294967168  ;;  %s353_s5 = sand.u32 1, %s2319_s30   ;;  %s357_s19 = scalar_lea.vmem [#allocation5], %s2584_s7 }
  0xe1   : > { %s354_s8 = scalar_lea.sflag [#allocation6], %s353_s5 }
  0xe2   : > { %2208 = dma.done.wait (%p2816_p3), %s354_s8, 256  }
  0xe3   : > { %2210 = vsyncadd (%p2816_p3), %s354_s8, 4294967040  ;;  %s366_s16 = scalar_lea.vmem [#allocation7], %s2584_s7  ;;  %p2817_p8 = scmp.eq.s32.totalorder %s2319_s30, 0 }
  0xe5   : > { %2212 = dma.done.wait (%p2817_p8), [#allocation9], 1024   ;;  %p2818_p12 = pmov %p2817_p8 }
  0xe6   : > { %p2819_p0 = pmov %p2817_p8 }
  0xe7   : > { %2214 = vsyncadd (%p2818_p12), [#allocation9], 4294966272 }
  0xe8   : > { %2216 = dma.done.wait (%p2819_p0), [#allocation12], 1024   ;;  %p2820_p7 = pmov %p2819_p0 }
  0xe9   : > { %v2248_v0 = vmov 0.0|0.0   ;;  %vm2249_vm0 = vmmov 0   ;;  %v2250_v1 = vmov 0.0   ;;  %v504_v2 = vld [vmem:[#allocation10] sm:$0xff]  ;;  %v505_v3 = vld [vmem:[#allocation10 + $0x8] sm:$0xff]  ;;  %v506_v7 = vld [vmem:[#allocation10 + $0x10] sm:$0xff] }
  0xea   : > { %2218 = vsyncadd (%p2820_p7), [#allocation12], 4294966272  ;;  %1821 = vmatprep.subr.bf16.mxu1 %v2248_v0  ;;  %1815 = vmatprep.subr.bf16.mxu0 %v2248_v0  ;;  %v426_v4 = vld [vmem:[#allocation8] sm:$0xff]  ;;  %v1822_v5 = vpack.c.bf16 %v505_v3, %v504_v2  ;;  %v427_v6 = vld [vmem:[#allocation8 + $0x8] sm:$0xff]  ;;  %vm430_vm1 = vcmask 261120   ;;  %vm682_vm2 = vcmask 64512  }
  0xeb   : > { %1750 = vmatprep.mubr.msk.f32.mxu1 %vm2249_vm0, %v2250_v1  ;;  %1739 = vmatprep.mubr.msk.f32.mxu0 %vm2249_vm0, %v2250_v1  ;;  %v507_v8 = vld [vmem:[#allocation10 + $0x18] sm:$0xff]  ;;  %v1816_v9 = vpack.c.bf16 %v427_v6, %v426_v4  ;;  %v428_v10 = vld [vmem:[#allocation8 + $0x10] sm:$0xff]  ;;  %v424_v14 = vld [vmem:[%s357_s19] sm:$0xff]  ;;  %s2251_s14 = smov 112   ;;  %s2252_s11 = smov 120   ;;  %vm1324_vm3 = vcmask 1040384  }
  0xec   : > { %v429_v11 = vld [vmem:[#allocation8 + $0x18] sm:$0xff]  ;;  %1823 = vmatpush3.bf16.msra.mxu1 %v1822_v5  ;;  %v1825_v12 = vpack.c.bf16 %v507_v8, %v506_v7  ;;  %v581_v16 = vld [vmem:[#allocation11] sm:$0xff]  ;;  %v582_v17 = vld [vmem:[#allocation11 + $0x8] sm:$0xff]  ;;  %s2253_s13 = smov 104   ;;  %vm1326_vm4 = vcmask 1041408   ;;  %vm1328_vm5 = vcmask 1042432  }
  0xed   : > { %1817 = vmatpush3.bf16.msra.mxu0 %v1816_v9  ;;  %1824 = vmatprep.subr.bf16.mxu1 %v2248_v0  ;;  %v1819_v13 = vpack.c.bf16 %v429_v11, %v428_v10  ;;  %v423_v15 = vld [vmem:[%s348_s17] sm:$0xff]  ;;  %v1828_v19 = vpack.c.bf16 %v582_v17, %v581_v16  ;;  %vm1330_vm6 = vcmask 1043456   ;;  %vm1332_vm7 = vcmask 1044480   ;;  %s2254_s20 = smov 16   ;;  %s2255_s1 = smov 8  }
  0xee   : > { %1818 = vmatprep.subr.bf16.mxu0 %v2248_v0  ;;  %v583_v18 = vld [vmem:[#allocation11 + $0x10] sm:$0xff]  ;;  %v584_v20 = vld [vmem:[#allocation11 + $0x18] sm:$0xff]  ;;  %vm1334_vm8 = vcmask 1045504   ;;  %vm1336_vm9 = vcmask 1046528   ;;  %s2256_s21 = smov 24   ;;  %vm1406_vm10 = vcmask 130048  }
  0xef   : > { %v1831_v21 = vpack.c.bf16 %v584_v20, %v583_v18  ;;  %v425_v22 = vld [vmem:[%s366_s16] sm:$0xff]  ;;  %v1411_v20 = vld [vmem:[#allocation13 + $0x8] sm:$0xff]  ;;  %vm1408_vm11 = vcmask 195584   ;;  %s1692_s22 = sshll.u32 %s2319_s30, 7  ;;  %s422_s10 = scalar_lea.vmem [#allocation14], %s2584_s7 }
  0xf0   : > { %1826 = vmatpush3.bf16.msra.mxu1 %v1825_v12  ;;  %s1502_s12 = sshll.u32 %s422_s10, 4  ;;  %s2821_s18 = sld [smem:[#allocation28_spill]]  ;;  %s2713_s12 = int_to_ptr.vmem [resolvable:$true] %s1502_s12 }
  0xf1   : > { %1820 = vmatpush3.bf16.msra.mxu0 %v1819_v13  ;;  %1764 = vmatprep.subr.mxu1 %v2250_v1  ;;  %s1489_s27 = scalar_lea.sflag [#allocation4], %s2581_s23  ;;  %s2159_s3 = scalar_lea.vmem %s2713_s12, 128 }
  0xf2   : > { %1827 = vmatprep.subr.bf16.mxu0 %v2248_v0  ;;  %p2160_p9 = scmp.ne.s32.totalorder %s2713_s12, %s2159_s3  ;;  %p2822_p13 = scmp.ne.s32.totalorder %s2801_s15, 0 }
  0xf3   : > { %1751 = vmatmul.mubr.msk.f32.vlgmr.msra.gmra.mrb[0].mxu1 %vm430_vm1, %v424_v14  ;;  %s2257_s30 = smov [#allocation14]  }
  0xf4   : > { %1740 = vmatmul.mubr.msk.f32.vlgmr.msra.gmra.mrb[0].mxu0 %vm430_vm1, %v423_v15  ;;  %1766 = vmatprep.mubr.msk.f32.mxu1 %vm2249_vm0, %v2250_v1  ;;  %p2161_p11 = pnand %p2160_p9, %p2822_p13  ;;  %s2163_s7 = sshll.u32 %s2257_s30, 4  ;;  %s2164_s7 = int_to_ptr.vmem [resolvable:$false] %s2163_s7 }
  0xf5   : > { %1761 = vmatprep.mubr.msk.f32.mxu0 %vm2249_vm0, %v2250_v1  ;;  %1829 = vmatpush3.bf16.msra.mxu0 %v1828_v19  ;;  %v1410_v19 = vld [vmem:[#allocation13] sm:$0xff]  ;;  %s2165_s24 = scalar_lea.vmem %s2164_s7, 256  ;;  %p2166_p6 = scmp.lt.s32.totalorder %s2713_s12, %s2164_s7 }
  0xf6   : > { %1830 = vmatprep.subr.bf16.mxu0 %v2248_v0  ;;  %s2711_s29 = scalar_lea.hbm %s2821_s18, %s1692_s22  ;;  %p2162_p1 = pneg %p2161_p11 }
  0xf7   : > { %p2167_p5 = scmp.lt.s32.totalorder %s2165_s24, %s2159_s3 }
  0xf9   : > { %1832 = vmatpush3.bf16.msra.mxu0 %v1831_v21  ;;  %v1834_v21 = vpack.c.bf16 %v1411_v20, %v1410_v19  ;;  %p2168_p2 = por %p2167_p5, %p2166_p6 }
  0xfa   : > { %1784 = vmatprep.subr.mxu0 %v2250_v1 }
  0xfb   : > { %p2169_p4 = pnand %p2168_p2, %p2162_p1 }
  0xfc   : > { %1762 = vmatmul.mubr.msk.f32.vlgmr.msra.gmra.mrb[2].mxu0 %vm430_vm1, %v425_v22 }
  0xfd   : > { %1786 = vmatprep.mubr.msk.f32.mxu0 %vm2249_vm0, %v2250_v1 }
 0x1c6   : > { %v577_v23 = vpop.f32.mrb[0].mxu1 }
 0x1c7   : > { %668 = vrot.lane.b32.xlu1 %v577_v23, %s2251_s14  ;;  %666 = vrot.lane.b32.xlu0 %v577_v23, %s2252_s11  ;;  %v1752_v24 = vpop.f32.mrb[1].mxu1  ;;  %v500_v25 = vpop.f32.mrb[0].mxu0 }
 0x1c8   : > { %1765 = vmatpush3.xpose.msk.msra.mxu1 %vm682_vm2, %v577_v23  ;;  %v1741_v26 = vpop.f32.mrb[1].mxu0 }
 0x1c9   : > { %1769 = vmatprep.subr.mxu1 %v2250_v1 }
 0x1cb   : > { %1767 = vmatmul.mubr.msk.f32.vlgmr.msra.gmra.mrb[2].mxu1 %vm682_vm2, %v500_v25  ;;  %661 = vrot.lane.b32.xlu1 %v500_v25, %s2251_s14 }
 0x1cc   : > { %659 = vrot.lane.b32.xlu0 %v500_v25, %s2252_s11  ;;  %1771 = vmatprep.mubr.msk.f32.mxu1 %vm2249_vm0, %v2250_v1 }
 0x1cf   : > { %663 = vrot.lane.b32.xlu1 %v500_v25, %s2253_s13  ;;  %v654_v27 = vpop.f32.mrb[2].mxu0 }
 0x1d0   : > { %670 = vrot.lane.b32.xlu0 %v577_v23, %s2253_s13  ;;  %v1763_v28 = vpop.f32.mrb[3].mxu0  ;;  %1785 = vmatpush3.msra.mxu0 %v654_v27 }
 0x1d1   : > { %1794 = vmatprep.subr.mxu0 %v2250_v1 }
 0x1d3   : > { %676 = vrot.lane.b32.xlu1 %v654_v27, %s2251_s14 }
 0x1d4   : > { %673 = vrot.lane.b32.xlu0 %v654_v27, %s2252_s11 }
 0x1d8   : > { %679 = vrot.lane.b32.xlu0 %v654_v27, %s2253_s13 }
 0x239   : > { %v667_v29 = vpop.permute.xlu0 %666  ;;  %v669_v30 = vpop.permute.xlu1 %668 }
 0x23a   : > { %1770 = vmatpush3.xpose.msk.msra.mxu1 %vm682_vm2, %v667_v29 }
 0x23b   : > { %1774 = vmatprep.subr.mxu1 %v2250_v1 }
 0x23d   : > { %v662_v32 = vpop.permute.xlu1 %661 }
 0x23e   : > { %v660_v31 = vpop.permute.xlu0 %659 }
 0x23f   : > { %1772 = vmatmul.mubr.msk.f32.vlgmr.msra.gmra.mrb[4].mxu1 %vm682_vm2, %v660_v31 }
 0x240   : > { %1775 = vmatpush3.xpose.msk.msra.mxu1 %vm682_vm2, %v669_v30  ;;  %1776 = vmatprep.mubr.msk.f32.mxu1 %vm2249_vm0, %v2250_v1 }
 0x241   : > { %1779 = vmatprep.subr.mxu1 %v2250_v1  ;;  %v664_v34 = vpop.permute.xlu1 %663 }
 0x242   : > { %v671_v33 = vpop.permute.xlu0 %670 }
 0x243   : > { %1777 = vmatmul.mubr.msk.f32.vlgmr.msra.gmra.mrb[6].mxu1 %vm682_vm2, %v662_v32 }
 0x244   : > { %1780 = vmatpush3.xpose.msk.msra.mxu1 %vm682_vm2, %v671_v33  ;;  %1781 = vmatprep.mubr.msk.f32.mxu1 %vm2249_vm0, %v2250_v1 }
 0x245   : > { %1789 = vmatprep.subr.mxu1 %v2250_v1  ;;  %v677_v13 = vpop.permute.xlu1 %676 }
 0x246   : > { %v674_v37 = vpop.permute.xlu0 %673 }
 0x247   : > { %1782 = vmatmul.mubr.msk.f32.vlgmr.msra.gmra.mrb[8].mxu1 %vm682_vm2, %v664_v34 }
 0x248   : > { %1791 = vmatprep.mubr.msk.f32.mxu1 %vm2249_vm0, %v2250_v1  ;;  %1790 = vmatpush3.msra.mxu1 %v674_v37 }
 0x249   : > { %1799 = vmatprep.subr.mxu1 %v2250_v1 }
 0x24a   : > { %v680_v14 = vpop.permute.xlu0 %679 }
 0x29e   : > { %v753_v35 = vpop.f32.mrb[2].mxu1 }
 0x29f   : > { %v1768_v36 = vpop.f32.mrb[3].mxu1  ;;  %v979_v38 = vmul.f32 0.35355338, %v753_v35 }
 0x2a1   : > { %v983_v42 = vsel %vm682_vm2, %v979_v38, -inf }
 0x312   : > { %v827_v39 = vpop.f32.mrb[4].mxu1 }
 0x313   : > { %v980_v40 = vmul.f32 0.35355338, %v827_v39  ;;  %v1773_v41 = vpop.f32.mrb[5].mxu1 }
 0x315   : > { %v984_v43 = vsel %vm682_vm2, %v980_v40, -inf }
 0x316   : > { %v987_v44 = vmax.f32 %v983_v42, %v984_v43  ;;  %v901_v45 = vpop.f32.mrb[6].mxu1 }
 0x317   : > { %v1778_v46 = vpop.f32.mrb[7].mxu1  ;;  %v981_v47 = vmul.f32 0.35355338, %v901_v45 }
 0x319   : > { %v985_v51 = vsel %vm682_vm2, %v981_v47, -inf }
 0x31a   : > { %v975_v48 = vpop.f32.mrb[8].mxu1 }
 0x31b   : > { %v982_v49 = vmul.f32 0.35355338, %v975_v48  ;;  %v1783_v50 = vpop.f32.mrb[9].mxu1 }
 0x31d   : > { %v986_v52 = vsel %vm682_vm2, %v982_v49, -inf }
 0x31e   : > { %v988_v53 = vmax.f32 %v985_v51, %v986_v52 }
 0x320   : > { %v989_v54 = vmax.f32 %v987_v44, %v988_v53 }
 0x322   : > { %v990_v55 = vsub.f32 %v979_v38, %v989_v54  ;;  %v991_v56 = vsub.f32 %v980_v40, %v989_v54  ;;  %v992_v57 = vsub.f32 %v981_v47, %v989_v54  ;;  %v993_v58 = vsub.f32 %v982_v49, %v989_v54 }
 0x324   : > { %v994_v59 = vmul.f32 1.442695, %v990_v55  ;;  %v996_v60 = vmul.f32 1.442695, %v991_v56  ;;  %v998_v61 = vmul.f32 1.442695, %v992_v57 }
 0x325   : > { %v1000_v62 = vmul.f32 1.442695, %v993_v58 }
 0x326   : > { %1947 = vpow2.f32 %v994_v59 }
 0x327   : > { %1949 = vpow2.f32 %v996_v60 }
 0x328   : > { %1951 = vpow2.f32 %v998_v61 }
 0x329   : > { %1953 = vpow2.f32 %v1000_v62 }
 0x330   : > { %v1948_v63 = vpop.eup %1947 }
 0x331   : > { %v1950_v2 = vpop.eup %1949  ;;  %v1002_v3 = vsel %vm682_vm2, %v1948_v63, 0.0 }
 0x332   : > { %v1952_v4 = vpop.eup %1951  ;;  %v1003_v5 = vsel %vm682_vm2, %v1950_v2, 0.0 }
 0x333   : > { %v1954_v6 = vpop.eup %1953  ;;  %v1004_v7 = vadd.f32 %v1003_v5, %v1002_v3  ;;  %v1005_v8 = vsel %vm682_vm2, %v1952_v4, 0.0 }
 0x334   : > { %v1007_v10 = vsel %vm682_vm2, %v1954_v6, 0.0 }
 0x335   : > { %v1006_v9 = vadd.f32 %v1005_v8, %v1004_v7 }
 0x337   : > { %v1008_v11 = vadd.f32 %v1007_v10, %v1006_v9 }
 0x339   : > { %1955 = vrcp.f32 %v1008_v11 }
 0x343   : > { %v1956_v12 = vpop.eup %1955 }
 0x344   : > { %v1010_v15 = vmul.f32 %v1956_v12, %v1948_v63  ;;  %v1011_v16 = vmul.f32 %v1956_v12, %v1950_v2  ;;  %v1012_v17 = vmul.f32 %v1956_v12, %v1952_v4  ;;  %v1013_v18 = vmul.f32 %v1956_v12, %v1954_v6  ;;  %v1412_v63 = vld [vmem:[#allocation13 + $0x10] sm:$0xff]  ;;  %v1413_v2 = vld [vmem:[#allocation13 + $0x18] sm:$0xff] }
 0x346   : > { %1787 = vmatmul.mubr.msk.f32.vlgmr.msra.gmra.mrb[4].mxu0 %vm682_vm2, %v1010_v15  ;;  %1792 = vmatmul.mubr.msk.f32.vlgmr.msra.gmra.mrb[10].mxu1 %vm682_vm2, %v1011_v16 }
 0x347   : > { %1795 = vmatpush3.msra.mxu0 %v677_v13  ;;  %1800 = vmatpush3.msra.mxu1 %v680_v14  ;;  %v1837_v14 = vpack.c.bf16 %v1413_v2, %v1412_v63 }
 0x348   : > { %1796 = vmatprep.mubr.msk.f32.mxu0 %vm2249_vm0, %v2250_v1  ;;  %1801 = vmatprep.mubr.msk.f32.mxu1 %vm2249_vm0, %v2250_v1 }
 0x349   : > { %1833 = vmatprep.subr.bf16.mxu0 %v2248_v0 }
 0x34a   : > { %1797 = vmatmul.mubr.msk.f32.vlgmr.msra.gmra.mrb[6].mxu0 %vm682_vm2, %v1012_v17  ;;  %1802 = vmatmul.mubr.msk.f32.vlgmr.msra.gmra.mrb[12].mxu1 %vm682_vm2, %v1013_v18 }
 0x34b   : > { %1812 = vmatprep.mubr.msk.f32.mxu0 %vm2249_vm0, %v2250_v1  ;;  %1835 = vmatpush3.bf16.msra.mxu0 %v1834_v21 }
 0x34c   : > { %1836 = vmatprep.subr.bf16.mxu0 %v2248_v0 }
 0x34f   : > { %1838 = vmatpush3.bf16.msra.mxu0 %v1837_v14 }
 0x419   : > { %v1083_v22 = vpop.f32.mrb[4].mxu0  ;;  %v1156_v23 = vpop.f32.mrb[10].mxu1 }
 0x41a   : > { %v1307_v24 = vrot.slane %v1083_v22, 3  ;;  %v1338_v25 = vrot.slane %v1083_v22, 1  ;;  %v1340_v26 = vrot.slane %v1083_v22, 4  ;;  %v1359_v27 = vrot.slane %v1083_v22, 2  ;;  %v1788_v28 = vpop.f32.mrb[5].mxu0  ;;  %v1793_v1 = vpop.f32.mrb[11].mxu1 }
 0x41b   : > { %v1361_v29 = vrot.slane %v1083_v22, 5  ;;  %v1380_v30 = vrot.slane %v1083_v22, 6  ;;  %v1310_v31 = vrot.slane %v1156_v23, 6  ;;  %v1312_v32 = vrot.slane %v1156_v23, 1 }
 0x41c   : > { %v1325_v0 = vsel %vm1324_vm3, %v1083_v22, %v1307_v24  ;;  %v1342_v33 = vrot.slane %v1156_v23, 7  ;;  %v1363_v34 = vrot.slane %v1156_v23, 3  ;;  %v1344_v38 = vrot.slane %v1156_v23, 2 }
 0x41d   : > { %v1229_v35 = vpop.f32.mrb[6].mxu0  ;;  %v1302_v36 = vpop.f32.mrb[12].mxu1  ;;  %v1373_v37 = vsel %vm1324_vm3, %v1359_v27, %v1361_v29  ;;  %v1352_v39 = vsel %vm1324_vm3, %v1338_v25, %v1340_v26  ;;  %v1382_v40 = vrot.slane %v1156_v23, 4  ;;  %v1386_v46 = vsel %vm1324_vm3, %v1307_v24, %v1380_v30 }
 0x41e   : > { %v1798_v41 = vpop.f32.mrb[7].mxu0  ;;  %v1803_v42 = vpop.f32.mrb[13].mxu1  ;;  %v1365_v43 = vrot.slane %v1229_v35, 6  ;;  %v1367_v44 = vrot.slane %v1229_v35, 1  ;;  %v1369_v45 = vrot.slane %v1302_v36, 4  ;;  %v1371_v47 = vrot.slane %v1302_v36, 7 }
 0x41f   : > { %v1374_v48 = vsel %vm1326_vm4, %v1373_v37, %v1156_v23  ;;  %v1346_v49 = vrot.slane %v1229_v35, 5  ;;  %v1348_v50 = vrot.slane %v1302_v36, 3  ;;  %v1350_v52 = vrot.slane %v1302_v36, 6 }
 0x420   : > { %v1375_v51 = vsel %vm1328_vm5, %v1374_v48, %v1363_v34  ;;  %v1353_v53 = vsel %vm1326_vm4, %v1352_v39, %v1342_v33  ;;  %v1317_v54 = vrot.slane %v1229_v35, 7  ;;  %v1384_v57 = vrot.slane %v1229_v35, 2 }
 0x421   : > { %v1376_v55 = vsel %vm1330_vm6, %v1375_v51, %v1365_v43  ;;  %v1354_v56 = vsel %vm1328_vm5, %v1353_v53, %v1344_v38  ;;  %v1387_v58 = vsel %vm1326_vm4, %v1386_v46, %v1312_v32  ;;  %v1322_v61 = vrot.slane %v1302_v36, 5 }
 0x422   : > { %v1377_v59 = vsel %vm1332_vm7, %v1376_v55, %v1367_v44  ;;  %v1355_v60 = vsel %vm1330_vm6, %v1354_v56, %v1346_v49  ;;  %v1388_v62 = vsel %vm1328_vm5, %v1387_v58, %v1382_v40  ;;  %v1327_v6 = vsel %vm1326_vm4, %v1325_v0, %v1310_v31 }
 0x423   : > { %v1378_v3 = vsel %vm1334_vm8, %v1377_v59, %v1369_v45  ;;  %v1356_v4 = vsel %vm1332_vm7, %v1355_v60, %v1229_v35  ;;  %v1389_v5 = vsel %vm1330_vm6, %v1388_v62, %v1317_v54  ;;  %v1329_v10 = vsel %vm1328_vm5, %v1327_v6, %v1312_v32 }
 0x424   : > { %v1379_v7 = vsel %vm1336_vm9, %v1378_v3, %v1371_v47  ;;  %v1357_v8 = vsel %vm1334_vm8, %v1356_v4, %v1348_v50  ;;  %v1390_v9 = vsel %vm1332_vm7, %v1389_v5, %v1384_v57  ;;  %v1315_v13 = vrot.slane %v1229_v35, 4 }
 0x425   : > { %1398 = vrot.lane.b32.xlu0 %v1379_v7, %s2254_s20  ;;  %v1358_v11 = vsel %vm1336_vm9, %v1357_v8, %v1350_v52  ;;  %v1391_v12 = vsel %vm1334_vm8, %v1390_v9, %v1322_v61  ;;  %v1320_v16 = vrot.slane %v1302_v36, 2 }
 0x426   : > { %1394 = vrot.lane.b32.xlu1 %v1358_v11, %s2255_s1  ;;  %v1392_v15 = vsel %vm1336_vm9, %v1391_v12, %v1302_v36  ;;  %v1331_v17 = vsel %vm1330_vm6, %v1329_v10, %v1315_v13 }
 0x427   : > { %v1333_v18 = vsel %vm1332_vm7, %v1331_v17, %v1317_v54 }
 0x428   : > { %v1335_v19 = vsel %vm1334_vm8, %v1333_v18, %v1320_v16 }
 0x429   : > { %v1337_v20 = vsel %vm1336_vm9, %v1335_v19, %v1322_v61 }
 0x42a   : > { %1402 = vrot.lane.b32.xlu1 %v1392_v15, %s2256_s21 }
 0x497   : > { %v1399_v22 = vpop.permute.xlu0 %1398 }
 0x498   : > { %v1395_v21 = vpop.permute.xlu1 %1394 }
 0x499   : > { %v1405_v23 = vsel %vm682_vm2, %v1337_v20, %v1395_v21 }
 0x49a   : > { %v1407_v25 = vsel %vm1406_vm10, %v1405_v23, %v1399_v22 }
 0x49c   : > { %v1403_v24 = vpop.permute.xlu1 %1402 }
 0x49d   : > { %v1409_v26 = vsel %vm1408_vm11, %v1407_v25, %v1403_v24 }
 0x49e   : > { %1813 = vmatmul.mubr.msk.f32.vlgmr.msra.gmra.mrb[8].mxu0 %vm430_vm1, %v1409_v26 }
 0x571   : > { %v1483_v27 = vpop.f32.mrb[8].mxu0 }
 0x572   : > { %1487 = vst.msk [vmem:[%s422_s10] sm:$0xff] %vm430_vm1, %v1483_v27  ;;  %v1814_v28 = vpop.f32.mrb[9].mxu0 }
 0x573   : > { %2172 = shalt.err (!%p2169_p4)
}
 0x574   : > { %s2173_s23 = scalar_lea.hbm %s2711_s29, 128  ;;  %s2177_s8 = scalar_lea.hbm %s2821_s18, 256 }
 0x575   : > { %p2174_p10 = scmp.ne.s32.totalorder %s2711_s29, %s2173_s23  ;;  %p2178_p12 = scmp.lt.u32.totalorder %s2711_s29, %s2821_s18 }
 0x576   : > { %p2179_p0 = scmp.lt.u32.totalorder %s2177_s8, %s2173_s23  ;;  %p2181_p9 = scmp.lt.u32.totalorder %s2173_s23, %s2711_s29 }
 0x577   : > { %p2175_p3 = pnand %p2174_p10, %p2822_p13 }
 0x578   : > { %p2180_p7 = por %p2179_p0, %p2178_p12 }
 0x579   : > { %p2176_p8 = pneg %p2175_p3 }
 0x57a   : > { %p2182_p11 = por %p2181_p9, %p2180_p7 }
 0x57c   : > { %p2183_p1 = pnand %p2182_p11, %p2176_p8 }
 0x57e   : > { %2186 = shalt.err (!%p2183_p1)
}
 0x57f   : > { %1861 = dma.vmem_to_hbm [thread:$0]  (%p2822_p13), %s2713_s12, 128, %s2711_s29, %s1489_s27  }
 0x580 PF: > { %s2823_s14 = sld [smem:[#allocation20_spill]]  ;;  %s2824_s11 = sld [smem:[#allocation24_spill]] }
 0x581   : > { %s2825_s13 = sld [smem:[#allocation21_spill]] }
 0x586   : > { %s1514_s20 = sand.u32 1, %s2823_s14   ;;  %p2826_p6 = scmp.ne.s32.totalorder %s2824_s11, 0 }
 0x587   : > { %p2827_p5 = scmp.ge.s32.totalorder %s2825_s13, 2  ;;  %s1515_s1 = scalar_lea.sflag [#allocation4], %s1514_s20 }
 0x589   : > { %p1887_p2 = pnand %p2827_p5, %p2826_p6 }
 0x58b   : > { %2220 = dma.done.wait (!%p1887_p2), %s1515_s1, 128  }
 0x58c   : > { %2222 = vsyncadd (!%p1887_p2), %s1515_s1, 4294967168  ;;  %s2828_s27 = sld [smem:[#allocation22_spill]]  ;;  %s2829_s21 = sld [smem:[#allocation23_spill]] }
 0x58d   : > { %s2830_s24 = smov %s2229_s25  ;;  %s2831_s25 = smov %s2233_s26 }
 0x592   : > { %p25_p4 = scmp.ge.s32.totalorder %s2828_s27, 4   ;;  %s2832_s26 = smov %s2829_s21 }
 0x594   :  { %27 = sbr.rel (!%p25_p4) target bundleno = 14 (0xe), region = 133 }
 0x59b   :  { %1520 = vsyncpa [#allocation3], 1 }
 0x59c   :  { %1522 = vsyncpa [#allocation3 + $0x1], 1 }
 0x59d   :  { %1523 = vsyncpa [#allocation6], 1 }
 0x59e   :  { %1525 = vsyncpa [#allocation6 + $0x1], 1 }
 0x59f   :  { %1526 = vsyncpa [#allocation9], 1 }
 0x5a0   :  { %1527 = vsyncpa [#allocation12], 1 }
 0x5a1   :  { %1528 = vsyncpa [#allocation4], 1 }
 0x5a2   :  { %1530 = vsyncpa [#allocation4 + $0x1], 1 }

</bundles_post_ra>
